<compile_context>
chip_gen: v5e
topology: v5e:2x2
jax: 0.10.0
libtpu: 0.0.40
codegen_flags: <defaults>
</compile_context>

<pallas_src>
import jax
import jax.numpy as jnp
from jax.experimental import pallas as pl
from jax.experimental.pallas import tpu as pltpu

H1, H2 = 128, 64


def mlp_kernel(x_ref, w1_ref, b1_ref, w2_ref, b2_ref, w3_ref, b3_ref, out_ref):
    # One (tb, in_dim) tile of rows per grid step; all weights are VMEM-resident.
    x = x_ref[...]

    # Layer 1: Linear(input_dim, 128) + ReLU.
    # K = input_dim (4) wastes most of the MXU systolic depth, but the kernel is
    # HBM/overhead-bound, so the MXU is not the binding unit; jnp.dot kept.
    h1 = jnp.dot(x, w1_ref[...], preferred_element_type=jnp.float32) + b1_ref[...]
    h1 = jnp.maximum(h1, 0.0)

    # Layer 2: Linear(128, 64) + ReLU
    h2 = jnp.dot(h1, w2_ref[...], preferred_element_type=jnp.float32) + b2_ref[...]
    h2 = jnp.maximum(h2, 0.0)

    # Layer 3: Linear(64, output_dim) padded to 8 output columns, no activation.
    out = jnp.dot(h2, w3_ref[...], preferred_element_type=jnp.float32) + b3_ref[...]

    out_ref[...] = out.astype(out_ref.dtype)


def _round_up(n, m):
    return ((n + m - 1) // m) * m


def prepare_params(raw_params):
    """One-time parameter prep (hoisted out of the per-call forward):
    zero-pad the final layer's columns up to a multiple of 8 so the output block
    shape is legal while keeping the HBM write stream small."""
    w3, b3 = raw_params["w3"], raw_params["b3"]
    out_dim = w3.shape[1]
    out_pad = max(8, _round_up(out_dim, 8))
    w3p = jnp.zeros((w3.shape[0], out_pad), w3.dtype).at[:, :out_dim].set(w3)
    b3p = jnp.zeros((1, out_pad), b3.dtype).at[:, :out_dim].set(b3)
    prepped = dict(raw_params)
    prepped["w3"], prepped["b3"] = w3p, b3p
    return prepped, out_dim


def mlp_forward(x, params, out_dim, *, block_rows=1024):
    """x: (batch, input_dim) float32.
    params: output of prepare_params (w3/b3 pre-padded to a multiple of 8 cols).
    Returns (batch, out_dim) float32 logits."""
    w1, b1 = params["w1"], params["b1"]
    w2, b2 = params["w2"], params["b2"]
    w3p, b3p = params["w3"], params["b3"]

    batch, in_dim = x.shape
    out_pad = w3p.shape[1]

    # --- batch tiling -------------------------------------------------------
    block_rows = max(8, (block_rows // 8) * 8)   # sublane (8,*) rule
    block_rows = min(block_rows, 4096)           # v5e 16 MiB scoped-VMEM guard
    batch8 = _round_up(batch, 8)
    # Aim for >=4 grid steps (>=2 per TensorCore on v7x) so each core pipelines
    # its x/out DMAs behind compute, while capping the tile at block_rows.
    tb = min(block_rows, max(8, _round_up(pl.cdiv(batch8, 4), 8)))
    padded_batch = _round_up(batch, tb)
    if padded_batch != batch:
        x = jnp.pad(x, ((0, padded_batch - batch), (0, 0)))
    grid = (padded_batch // tb,)

    # x / out are tiled along the batch axis; weights & biases use a constant
    # block index so they are DMA'd once and stay VMEM-resident across steps.
    in_specs = [
        pl.BlockSpec((tb, in_dim), lambda i: (i, 0)),      # x rows
        pl.BlockSpec((in_dim, H1), lambda i: (0, 0)),      # w1 (resident)
        pl.BlockSpec((1, H1), lambda i: (0, 0)),           # b1
        pl.BlockSpec((H1, H2), lambda i: (0, 0)),          # w2
        pl.BlockSpec((1, H2), lambda i: (0, 0)),           # b2
        pl.BlockSpec((H2, out_pad), lambda i: (0, 0)),     # w3 (padded to 8)
        pl.BlockSpec((1, out_pad), lambda i: (0, 0)),      # b3 (padded to 8)
    ]
    out_specs = pl.BlockSpec((tb, out_pad), lambda i: (i, 0))

    flops = 2 * padded_batch * (in_dim * H1 + H1 * H2 + H2 * out_pad)
    weight_bytes = 4 * (in_dim * H1 + H1 + H1 * H2 + H2 + H2 * out_pad + out_pad)
    bytes_accessed = 4 * padded_batch * (in_dim + out_pad) + weight_bytes

    logits_padded = pl.pallas_call(
        mlp_kernel,
        out_shape=jax.ShapeDtypeStruct((padded_batch, out_pad), jnp.float32),
        grid=grid,
        in_specs=in_specs,
        out_specs=out_specs,
        compiler_params=pltpu.CompilerParams(
            dimension_semantics=("parallel",),
        ),
        cost_estimate=pl.CostEstimate(
            flops=flops, transcendentals=0, bytes_accessed=bytes_accessed),
    )(x, w1, b1, w2, b2, w3p, b3p)

    # Drop batch padding and the (zero-)padded output columns (8-wide, cheap).
    return logits_padded[:batch, :out_dim]


def init_params(key, input_dim, output_dim):
    """Deterministic init mirroring PyTorch nn.Linear default:
    U(-1/sqrt(fan_in), 1/sqrt(fan_in)) for both weight and bias."""
    dims = [(input_dim, H1), (H1, H2), (H2, output_dim)]
    params = {}
    for i, (fan_in, fan_out) in enumerate(dims, start=1):
        key, kw, kb = jax.random.split(key, 3)
        bound = 1.0 / (fan_in ** 0.5)
        # Stored as (in, out) so the kernel computes x @ W (== x @ W_torch^T).
        params[f"w{i}"] = jax.random.uniform(
            kw, (fan_in, fan_out), jnp.float32, -bound, bound)
        params[f"b{i}"] = jax.random.uniform(
            kb, (1, fan_out), jnp.float32, -bound, bound)
    return params


def _reference(x, raw_params):
    h = jnp.maximum(x @ raw_params["w1"] + raw_params["b1"], 0.0)
    h = jnp.maximum(h @ raw_params["w2"] + raw_params["b2"], 0.0)
    return h @ raw_params["w3"] + raw_params["b3"]


if __name__ == "__main__":
    input_dim, output_dim = 4, 3   # iris: 4 features, 3 classes
    batch = 8

    key = jax.random.PRNGKey(0)
    key, kx = jax.random.split(key)
    x = jax.random.normal(kx, (batch, input_dim), dtype=jnp.float32)
    raw_params = init_params(key, input_dim, output_dim)

    # One-time prep (hoisted out of the per-call forward path).
    params, out_dim = prepare_params(raw_params)

    logits = mlp_forward(x, params, out_dim)
    jax.block_until_ready(logits)
    assert logits.shape == (batch, output_dim)
    assert jnp.allclose(logits, _reference(x, raw_params), atol=1e-5, rtol=1e-5)

    # Larger, non-multiple-of-tile batch: exercises padding + a 4-step grid.
    key, kx2 = jax.random.split(key)
    x_big = jax.random.normal(kx2, (1000, input_dim), dtype=jnp.float32)
    logits_big = mlp_forward(x_big, params, out_dim)
    jax.block_until_ready(logits_big)
    assert logits_big.shape == (1000, output_dim)
    assert jnp.allclose(logits_big, _reference(x_big, raw_params),
                        atol=1e-5, rtol=1e-5)

    print("KERNEL_OK")
</pallas_src>

<mosaic_0001>
module attributes {stable_mosaic.version = 11 : i64} {
  func.func @mlp_kernel(%arg0: i32, %arg1: memref<8x4xf32, #tpu.memory_space<vmem>>, %arg2: memref<4x128xf32, #tpu.memory_space<vmem>>, %arg3: memref<1x128xf32, #tpu.memory_space<vmem>>, %arg4: memref<128x64xf32, #tpu.memory_space<vmem>>, %arg5: memref<1x64xf32, #tpu.memory_space<vmem>>, %arg6: memref<64x8xf32, #tpu.memory_space<vmem>>, %arg7: memref<1x8xf32, #tpu.memory_space<vmem>>, %arg8: memref<8x8xf32, #tpu.memory_space<vmem>>) attributes {dimension_semantics = [#tpu.dimension_semantics<parallel>], iteration_bounds = array<i64: 1>, scalar_prefetch = 0 : i64, scratch_operands = 0 : i64, tpu.core_type = #tpu.core_type<tc>, window_params = [{transform_indices = @transform_0, window_bounds = array<i64: 8, 4>}, {pipeline_mode = #tpu.pipeline_mode<synchronous>, transform_indices = @transform_1, window_bounds = array<i64: 4, 128>}, {pipeline_mode = #tpu.pipeline_mode<synchronous>, transform_indices = @transform_2, window_bounds = array<i64: 1, 128>}, {pipeline_mode = #tpu.pipeline_mode<synchronous>, transform_indices = @transform_3, window_bounds = array<i64: 128, 64>}, {pipeline_mode = #tpu.pipeline_mode<synchronous>, transform_indices = @transform_4, window_bounds = array<i64: 1, 64>}, {pipeline_mode = #tpu.pipeline_mode<synchronous>, transform_indices = @transform_5, window_bounds = array<i64: 64, 8>}, {pipeline_mode = #tpu.pipeline_mode<synchronous>, transform_indices = @transform_6, window_bounds = array<i64: 1, 8>}, {transform_indices = @transform_7, window_bounds = array<i64: 8, 8>}]} {
    %c0 = arith.constant 0 : index
    %c0_0 = arith.constant 0 : index
    %0 = vector.load %arg1[%c0, %c0_0] : memref<8x4xf32, #tpu.memory_space<vmem>>, vector<8x4xf32>
    %c0_1 = arith.constant 0 : index
    %c0_2 = arith.constant 0 : index
    %1 = vector.load %arg2[%c0_1, %c0_2] : memref<4x128xf32, #tpu.memory_space<vmem>>, vector<4x128xf32>
    %cst = arith.constant dense<0.000000e+00> : vector<8x128xf32>
    %2 = tpu.matmul %0, %1, %cst {dimension_numbers = #tpu.dot_dimension_numbers<[1], [0], [0], [1], [0, 0, 1, 1], [], []>} : vector<8x4xf32>, vector<4x128xf32>, vector<8x128xf32> -> vector<8x128xf32>
    %c0_3 = arith.constant 0 : index
    %c0_4 = arith.constant 0 : index
    %3 = vector.load %arg3[%c0_3, %c0_4] : memref<1x128xf32, #tpu.memory_space<vmem>>, vector<1x128xf32>
    %4 = vector.broadcast %3 : vector<1x128xf32> to vector<8x128xf32>
    %5 = arith.addf %2, %4 : vector<8x128xf32>
    %cst_5 = arith.constant 0.000000e+00 : f32
    %6 = vector.broadcast %cst_5 : f32 to vector<8x128xf32>
    %7 = arith.maximumf %5, %6 : vector<8x128xf32>
    %c0_6 = arith.constant 0 : index
    %c0_7 = arith.constant 0 : index
    %8 = vector.load %arg4[%c0_6, %c0_7] : memref<128x64xf32, #tpu.memory_space<vmem>>, vector<128x64xf32>
    %cst_8 = arith.constant dense<0.000000e+00> : vector<8x64xf32>
    %9 = tpu.matmul %7, %8, %cst_8 {dimension_numbers = #tpu.dot_dimension_numbers<[1], [0], [0], [1], [0, 0, 1, 1], [], []>} : vector<8x128xf32>, vector<128x64xf32>, vector<8x64xf32> -> vector<8x64xf32>
    %c0_9 = arith.constant 0 : index
    %c0_10 = arith.constant 0 : index
    %10 = vector.load %arg5[%c0_9, %c0_10] : memref<1x64xf32, #tpu.memory_space<vmem>>, vector<1x64xf32>
    %11 = vector.broadcast %10 : vector<1x64xf32> to vector<8x64xf32>
    %12 = arith.addf %9, %11 : vector<8x64xf32>
    %cst_11 = arith.constant 0.000000e+00 : f32
    %13 = vector.broadcast %cst_11 : f32 to vector<8x64xf32>
    %14 = arith.maximumf %12, %13 : vector<8x64xf32>
    %c0_12 = arith.constant 0 : index
    %c0_13 = arith.constant 0 : index
    %15 = vector.load %arg6[%c0_12, %c0_13] : memref<64x8xf32, #tpu.memory_space<vmem>>, vector<64x8xf32>
    %cst_14 = arith.constant dense<0.000000e+00> : vector<8x8xf32>
    %16 = tpu.matmul %14, %15, %cst_14 {dimension_numbers = #tpu.dot_dimension_numbers<[1], [0], [0], [1], [0, 0, 1, 1], [], []>} : vector<8x64xf32>, vector<64x8xf32>, vector<8x8xf32> -> vector<8x8xf32>
    %c0_15 = arith.constant 0 : index
    %c0_16 = arith.constant 0 : index
    %17 = vector.load %arg7[%c0_15, %c0_16] : memref<1x8xf32, #tpu.memory_space<vmem>>, vector<1x8xf32>
    %18 = vector.broadcast %17 : vector<1x8xf32> to vector<8x8xf32>
    %19 = arith.addf %16, %18 : vector<8x8xf32>
    %c0_17 = arith.constant 0 : index
    %c0_18 = arith.constant 0 : index
    %20 = vector.load %arg8[%c0_17, %c0_18] : memref<8x8xf32, #tpu.memory_space<vmem>>, vector<8x8xf32>
    tpu.vector_store %arg8[%c0_17, %c0_18], %19 {strides = array<i32>} : memref<8x8xf32, #tpu.memory_space<vmem>>, vector<8x8xf32>,
    return
  }
  func.func @transform_0(%arg0: i32) -> (i32, i32) {
    %c0_i32 = arith.constant 0 : i32
    %c0_i32_0 = arith.constant 0 : i32
    return %arg0, %c0_i32 : i32, i32
  }
  func.func @transform_1(%arg0: i32) -> (i32, i32) {
    %c0_i32 = arith.constant 0 : i32
    %c0_i32_0 = arith.constant 0 : i32
    %c0_i32_1 = arith.constant 0 : i32
    return %c0_i32, %c0_i32_0 : i32, i32
  }
  func.func @transform_2(%arg0: i32) -> (i32, i32) {
    %c0_i32 = arith.constant 0 : i32
    %c0_i32_0 = arith.constant 0 : i32
    %c0_i32_1 = arith.constant 0 : i32
    return %c0_i32, %c0_i32_0 : i32, i32
  }
  func.func @transform_3(%arg0: i32) -> (i32, i32) {
    %c0_i32 = arith.constant 0 : i32
    %c0_i32_0 = arith.constant 0 : i32
    %c0_i32_1 = arith.constant 0 : i32
    return %c0_i32, %c0_i32_0 : i32, i32
  }
  func.func @transform_4(%arg0: i32) -> (i32, i32) {
    %c0_i32 = arith.constant 0 : i32
    %c0_i32_0 = arith.constant 0 : i32
    %c0_i32_1 = arith.constant 0 : i32
    return %c0_i32, %c0_i32_0 : i32, i32
  }
  func.func @transform_5(%arg0: i32) -> (i32, i32) {
    %c0_i32 = arith.constant 0 : i32
    %c0_i32_0 = arith.constant 0 : i32
    %c0_i32_1 = arith.constant 0 : i32
    return %c0_i32, %c0_i32_0 : i32, i32
  }
  func.func @transform_6(%arg0: i32) -> (i32, i32) {
    %c0_i32 = arith.constant 0 : i32
    %c0_i32_0 = arith.constant 0 : i32
    %c0_i32_1 = arith.constant 0 : i32
    return %c0_i32, %c0_i32_0 : i32, i32
  }
  func.func @transform_7(%arg0: i32) -> (i32, i32) {
    %c0_i32 = arith.constant 0 : i32
    %c0_i32_0 = arith.constant 0 : i32
    return %arg0, %c0_i32 : i32, i32
  }
}

</mosaic_0001>

<bundles_post_ra>
// kernel: tpu_custom_call.1
= control target key start
LH: loop header
LB: loop body
LE: loop exit
PB: predicated region body
PF: predicated region fallthrough
CT: control target
= control target key end

     0   :  { %vm37_vm0 = vcmask 1043456   ;;  %vm33_vm1 = vcmask 31744   ;;  %s321_s0 = inlined_call_operand.vmem [shape: f32[8,4], index: 0, kind: input, shape index: {}]   ;;  %s322_s1 = inlined_call_operand.vmem [shape: f32[4,128], index: 1, kind: input, shape index: {}]   ;;  %s323_s2 = inlined_call_operand.vmem [shape: f32[1,128], index: 2, kind: input, shape index: {}]   ;;  %s324_s3 = inlined_call_operand.vmem [shape: f32[128,64], index: 3, kind: input, shape index: {}]   ;;  %s325_s4 = inlined_call_operand.vmem [shape: f32[1,64], index: 4, kind: input, shape index: {}]   ;;  %s326_s5 = inlined_call_operand.vmem [shape: f32[64,8], index: 5, kind: input, shape index: {}]   ;;  %s327_s6 = inlined_call_operand.vmem [shape: f32[1,8], index: 6, kind: input, shape index: {}]   ;;  %s328_s7 = inlined_call_operand.hbm [shape: f32[8,8], index: 7, kind: output, shape index: {}]  }
   0x1   :  { %v28_v0 = vld [vmem:[%s322_s1] sm:$0xf]  ;;  %v77_v2 = vld [vmem:[%s324_s3 + $0x78] sm:$0xff]  ;;  %v76_v3 = vld [vmem:[%s324_s3 + $0x70] sm:$0xff] }
   0x2   :  { %v27_v1 = vld [vmem:[%s321_s0] sm:$0xff]  ;;  %157 = vmatpush.msk.msra.mxu0 %vm37_vm0, %v28_v0  ;;  %82 = vmatpush.msra.mxu1 %v77_v2  ;;  %v75_v4 = vld [vmem:[%s324_s3 + $0x68] sm:$0xff]  ;;  %v73_v6 = vld [vmem:[%s324_s3 + $0x58] sm:$0xff] }
   0x3   :  { %158 = vmatmul.msk.f32.vlgmr.msra.gmra.mxu0 %vm33_vm1, %v27_v1  ;;  %v74_v5 = vld [vmem:[%s324_s3 + $0x60] sm:$0xff] }
   0x4   :  { %83 = vmatpush.msra.mxu1 %v76_v3 }
   0x6   :  { %84 = vmatpush.msra.mxu1 %v75_v4 }
   0x7   :  { %12 = vsyncpa [#allocation3], 0  ;;  %v72_v7 = vld [vmem:[%s324_s3 + $0x50] sm:$0xff]  ;;  %v71_v8 = vld [vmem:[%s324_s3 + $0x48] sm:$0xff]  ;;  %vm115_vm2 = vcmask 523264   ;;  %s190_s30 = smov [#allocation2]  }
   0x8   :  { %85 = vmatpush.msra.mxu1 %v74_v5  ;;  %v70_v9 = vld [vmem:[%s324_s3 + $0x40] sm:$0xff]  ;;  %v69_v10 = vld [vmem:[%s324_s3 + $0x38] sm:$0xff]  ;;  %v68_v11 = vld [vmem:[%s324_s3 + $0x30] sm:$0xff]  ;;  %s146_s8 = sshll.u32 %s190_s30, 4  ;;  %vm139_vm3 = vcmask 64512   ;;  %s147_s8 = int_to_ptr.vmem [resolvable:$true] %s146_s8 }
   0x9   :  { %v67_v12 = vld [vmem:[%s324_s3 + $0x28] sm:$0xff]  ;;  %v66_v13 = vld [vmem:[%s324_s3 + $0x20] sm:$0xff]  ;;  %v65_v14 = vld [vmem:[%s324_s3 + $0x18] sm:$0xff] }
   0xa   :  { %86 = vmatpush.msra.mxu1 %v73_v6  ;;  %v64_v15 = vld [vmem:[%s324_s3 + $0x10] sm:$0xff]  ;;  %v63_v16 = vld [vmem:[%s324_s3 + $0x8] sm:$0xff]  ;;  %v62_v17 = vld [vmem:[%s324_s3] sm:$0xff] }
   0xb   :  { %v110_v18 = vld [vmem:[%s326_s5 + $0x38] sm:$0xff]  ;;  %v109_v19 = vld [vmem:[%s326_s5 + $0x30] sm:$0xff]  ;;  %v108_v20 = vld [vmem:[%s326_s5 + $0x28] sm:$0xff] }
   0xc   :  { %87 = vmatpush.msra.mxu1 %v72_v7  ;;  %127 = vmatpush.msra.mxu2 %v110_v18  ;;  %v107_v21 = vld [vmem:[%s326_s5 + $0x20] sm:$0xff]  ;;  %v106_v22 = vld [vmem:[%s326_s5 + $0x18] sm:$0xff]  ;;  %v105_v27 = vld [vmem:[%s326_s5 + $0x10] sm:$0xff] }
   0xd   :  { %v161_v23 = vld [vmem:[%s323_s2] ss:$0 sm:$0xff]  ;;  %v104_v28 = vld [vmem:[%s326_s5 + $0x8] sm:$0xff] }
   0xe   :  { %88 = vmatpush.msra.mxu1 %v71_v8  ;;  %128 = vmatpush.msra.mxu2 %v109_v19  ;;  %v103_v29 = vld [vmem:[%s326_s5] sm:$0xff]  ;;  %s148_s5 = sshll.u32 %s328_s7, 4  ;;  %s149_s5 = int_to_ptr.hbm [resolvable:$true] %s148_s5 }
   0xf   :  { %v162_v30 = vld [vmem:[%s325_s4] ss:$0 sm:$0xff] }
  0x10   :  { %89 = vmatpush.msra.mxu1 %v70_v9  ;;  %129 = vmatpush.msra.mxu2 %v108_v20  ;;  %v163_v34 = vld [vmem:[%s327_s6] ss:$0 sm:$0xff] }
  0x12   :  { %90 = vmatpush.msra.mxu1 %v69_v10  ;;  %130 = vmatpush.msra.mxu2 %v107_v21 }
  0x14   :  { %91 = vmatpush.msra.mxu1 %v68_v11  ;;  %131 = vmatpush.msra.mxu2 %v106_v22 }
  0x16   :  { %92 = vmatpush.msra.mxu1 %v67_v12  ;;  %132 = vmatpush.msra.mxu2 %v105_v27 }
  0x18   :  { %93 = vmatpush.msra.mxu1 %v66_v13  ;;  %133 = vmatpush.msra.mxu2 %v104_v28 }
  0x1a   :  { %94 = vmatpush.msra.mxu1 %v65_v14  ;;  %134 = vmatpush.msra.mxu2 %v103_v29 }
  0x1c   :  { %95 = vmatpush.msra.mxu1 %v64_v15 }
  0x1e   :  { %96 = vmatpush.msra.mxu1 %v63_v16 }
  0x20   :  { %97 = vmatpush.msra.mxu1 %v62_v17 }
  0x80   :  { %v58_v24 = vpop.f32.mrf.mxu0 }
  0x81   :  { %v59_v25 = vadd.f32 %v161_v23, %v58_v24 }
  0x83   :  { %v61_v26 = vmax.f32 %v59_v25, 0.0 }
  0x85   :  { %98 = vmatmul.f32.vlgmr.msra.gmra.mxu1 %v61_v26 }
 0x102   :  { %v99_v31 = vpop.f32.mrf.mxu1 }
 0x103   :  { %v100_v32 = vadd.f32 %v162_v30, %v99_v31 }
 0x105   :  { %v102_v33 = vmax.f32 %v100_v32, 0.0 }
 0x107   :  { %159 = vmatmul.msk.f32.vlgmr.msra.gmra.mxu2 %vm115_vm2, %v102_v33 }
 0x18a   :  { %v136_v35 = vpop.f32.mrf.mxu2 }
 0x18b   :  { %v137_v36 = vadd.f32 %v163_v34, %v136_v35 }
 0x18d   :  { %140 = vst.msk [vmem:[#allocation2] sm:$0xff] %vm139_vm3, %v137_v36 }
 0x18e   :  { %151 = dma.vmem_to_hbm [thread:$0]  %s147_s8, 128, %s149_s5, [#allocation3]  }
 0x18f   :  { %188 = dma.done.wait [#allocation3], 128  }
 0x190   :  { %189 = vsyncadd [#allocation3], 4294967168 }
 0x191   :  { %156 = vsyncpa [#allocation3], 1 }

</bundles_post_ra>
